<compile_context>
chip_gen: v6e
topology: v6e:2x2x1
jax: 0.10.0
libtpu: 0.0.40
codegen_flags: <defaults>
</compile_context>

<pallas_src>
import functools

import jax
import jax.numpy as jnp
from jax.experimental import pallas as pl
from jax.experimental.pallas import tpu as pltpu

LANE = 128             # vreg lane width (last dim of every block)
MAX_BLOCK_ROWS = 4096  # 4096x128 f32 = 2 MiB per input block; 2 inputs x 2
                       # pipeline buffers = 8 MiB live VMEM.


def _num_core_slots():
    """2 'parallel' grid slots on multi-TensorCore chips, else 1.

    On 1-TC chips (v5e/v6e) a 2-wide parallel axis is just a serial outer loop
    that doubles the init epilogue and can issue a fully-masked duplicate
    block, so the axis is sized to the hardware.  Purely a perf knob.
    """
    try:
        kind = jax.devices()[0].device_kind.lower()
    except Exception:
        return 1
    return 2 if any(tag in kind for tag in ("v7", "v5p", "v4")) else 1


def _make_kernel(block_rows, rows_total, full_block_limit, all_full):
    """Builds the reduction kernel (all tiling parameters are static)."""

    def kernel(p_ref, t_ref, out_ref):
        c = pl.program_id(0)              # core-slot ("parallel") axis
        i = pl.program_id(1)              # reduction ("arbitrary") axis
        n_steps = pl.num_programs(1)

        @pl.when(i == 0)
        def _init():
            out_ref[...] = jnp.zeros_like(out_ref)

        def load():
            # Upcast in-vreg: HBM bytes stay at the source dtype (bf16 inputs
            # would be read at half the bytes).
            return (p_ref[...].astype(jnp.float32),
                    t_ref[...].astype(jnp.float32))

        def accumulate(p, t):
            # PyTorch nn.BCELoss clamps each log term at -100 (so 0*log(0)->0).
            log_p = jnp.maximum(jnp.log(p), jnp.float32(-100.0))
            log_1mp = jnp.maximum(jnp.log(1.0 - p), jnp.float32(-100.0))
            bce = -(t * log_p + (1.0 - t) * log_1mp)
            # Lane-local partial sums (one sublane reduce per quantity); the
            # single cross-lane reduce happens once on the tiny output in the
            # jitted epilogue.  Accumulate straight into the VMEM-resident
            # output block (its index_map is constant along i).
            partial = jnp.concatenate(
                [jnp.sum(bce, axis=0, keepdims=True),
                 jnp.sum(p * t, axis=0, keepdims=True),
                 jnp.sum(p, axis=0, keepdims=True),
                 jnp.sum(t, axis=0, keepdims=True)],
                axis=0)                                   # (4, LANE)
            out_ref[...] += partial[jnp.newaxis, :, :]

        if all_full:
            # Statically known: every scheduled block is fully in range.
            p, t = load()
            accumulate(p, t)
        else:
            g = c * n_steps + i           # global (unclamped) block index

            @pl.when(g < full_block_limit)
            def _interior():              # fully in-range: no mask work at all
                p, t = load()
                accumulate(p, t)

            @pl.when(g >= full_block_limit)
            def _edge():                  # partial last block / clamped dup
                p, t = load()
                row_ids = g * block_rows + jax.lax.broadcasted_iota(
                    jnp.int32, (block_rows, LANE), 0)
                valid = row_ids < rows_total
                # Zeros are neutral for every sum (bce(0,0)=0 with the clamp).
                accumulate(jnp.where(valid, p, 0.0),
                           jnp.where(valid, t, 0.0))

    return kernel


def _partial_sums_2d(p2d, t2d, num_slots):
    """Pallas call: (rows, 128) inputs -> 4 scalar sums (bce, p*t, p, t)."""
    rows = p2d.shape[0]
    block_rows = rows if rows <= MAX_BLOCK_ROWS else MAX_BLOCK_ROWS
    total_blocks = pl.cdiv(rows, block_rows)
    steps = pl.cdiv(total_blocks, num_slots)
    full_block_limit = rows // block_rows            # # of fully valid blocks
    all_full = (num_slots * steps == full_block_limit)

    def in_map(c, i):
        # Clamp so the DMA never starts past the end of the array; clamped
        # (duplicate) blocks are fully masked inside the kernel.
        return (jnp.minimum(c * steps + i, total_blocks - 1), 0)

    in_spec = pl.BlockSpec((block_rows, LANE), in_map)
    out_spec = pl.BlockSpec((1, 4, LANE), lambda c, i: (c, 0, 0))

    out = pl.pallas_call(
        _make_kernel(block_rows, rows, full_block_limit, all_full),
        out_shape=jax.ShapeDtypeStruct((num_slots, 4, LANE), jnp.float32),
        grid=(num_slots, steps),
        in_specs=[in_spec, in_spec],
        out_specs=out_spec,
        compiler_params=pltpu.CompilerParams(
            dimension_semantics=("parallel", "arbitrary")),
    )(p2d, t2d)

    # Reduce the tiny (num_slots, 4, 128) lane partials to 4 scalars (XLA).
    sums = jnp.sum(out, axis=(0, 2))
    return sums[0], sums[1], sums[2], sums[3]


@functools.partial(jax.jit, static_argnames=("num_slots",))
def _forward(input_, target, num_slots):
    p_flat = jnp.reshape(input_, (-1,))
    t_flat = jnp.reshape(target, (-1,))
    n = p_flat.shape[0]
    rows = n // LANE
    rem = n - rows * LANE

    sum_bce = sum_pt = sum_p = sum_t = jnp.float32(0.0)

    if rows > 0:
        if rem == 0:
            main_p, main_t = p_flat, t_flat   # common case: zero extra copies
        else:
            main_p = p_flat[: rows * LANE]
            main_t = t_flat[: rows * LANE]
        s_bce, s_pt, s_p, s_t = _partial_sums_2d(
            main_p.reshape(rows, LANE), main_t.reshape(rows, LANE), num_slots)
        sum_bce, sum_pt, sum_p, sum_t = s_bce, s_pt, s_p, s_t

    if rem:
        # TODO(synk): the <128-element ragged tail is reduced in plain XLA; for
        # non-128-multiple sizes the prefix slice above may still cost one
        # extra HBM pass over the bulk (a manual-DMA 1-D kernel would remove
        # it).  It never triggers for 128-multiple activation shapes.
        tp = p_flat[rows * LANE:].astype(jnp.float32)
        tt = t_flat[rows * LANE:].astype(jnp.float32)
        tail_bce = -(tt * jnp.maximum(jnp.log(tp), -100.0)
                     + (1.0 - tt) * jnp.maximum(jnp.log(1.0 - tp), -100.0))
        sum_bce = sum_bce + jnp.sum(tail_bce)
        sum_pt = sum_pt + jnp.sum(tp * tt)
        sum_p = sum_p + jnp.sum(tp)
        sum_t = sum_t + jnp.sum(tt)

    bce_loss = sum_bce / jnp.float32(n)
    dice_coef = (2.0 * sum_pt + 1.0) / (sum_p + sum_t + 1.0)
    # TODO(synk): PyTorch casts the final combination to float64 (.double());
    # without jax_enable_x64 this epilogue stays float32 (the accumulation is
    # float32 either way, so parity is limited by that regardless).
    return bce_loss + (1.0 - dice_coef)


def bce_dice_loss(input_, target, pred):
    """Forward of BCEDiceLoss.  `pred` is accepted but unused (as in PyTorch)."""
    del pred  # unused by the reference module
    return _forward(input_, target, num_slots=_num_core_slots())


if __name__ == "__main__":
    key = jax.random.PRNGKey(0)
    k1, k2, k3 = jax.random.split(key, 3)

    B, C, H, W = 2, 4, 16, 16
    # `input` must be probabilities in (0, 1) for BCELoss.
    x = jax.nn.sigmoid(jax.random.normal(k1, (B, C, H, W), dtype=jnp.float32))
    # binary target
    t = jax.random.bernoulli(k2, 0.5, (B, C, H, W)).astype(jnp.float32)
    # `pred` arg is unused by the module's forward; construct it anyway.
    pred = jax.nn.sigmoid(jax.random.normal(k3, (B, C, H, W), dtype=jnp.float32))

    loss = jax.block_until_ready(bce_dice_loss(x, t, pred))

    # Pure-jnp reference for a sanity check.
    pf = x.reshape(-1).astype(jnp.float32)
    tf = t.reshape(-1).astype(jnp.float32)
    ref_bce = jnp.mean(-(tf * jnp.maximum(jnp.log(pf), -100.0)
                         + (1.0 - tf) * jnp.maximum(jnp.log(1.0 - pf), -100.0)))
    ref_dice = (2.0 * jnp.sum(pf * tf) + 1.0) / (jnp.sum(pf) + jnp.sum(tf) + 1.0)
    ref = ref_bce + (1.0 - ref_dice)

    assert jnp.isfinite(loss)
    assert jnp.allclose(loss, ref, rtol=1e-4, atol=1e-5), (loss, ref)
    print("KERNEL_OK")
</pallas_src>

<mosaic_0001>
module attributes {stable_mosaic.version = 11 : i64} {
  func.func @kernel(%arg0: i32, %arg1: i32, %arg2: memref<16x128xf32, #tpu.memory_space<vmem>>, %arg3: memref<16x128xf32, #tpu.memory_space<vmem>>, %arg4: memref<1x4x128xf32, #tpu.memory_space<vmem>>) attributes {dimension_semantics = [#tpu.dimension_semantics<parallel>, #tpu.dimension_semantics<arbitrary>], iteration_bounds = array<i64: 1, 1>, scalar_prefetch = 0 : i64, scratch_operands = 0 : i64, tpu.core_type = #tpu.core_type<tc>, window_params = [{transform_indices = @transform_0, window_bounds = array<i64: 16, 128>}, {transform_indices = @transform_1, window_bounds = array<i64: 16, 128>}, {transform_indices = @transform_2, window_bounds = array<i64: 1, 4, 128>}]} {
    %c0_i32 = arith.constant 0 : i32
    %0 = arith.cmpi eq, %arg1, %c0_i32 : i32
    %1 = arith.extui %0 : i1 to i32
    %c0_i32_0 = arith.constant 0 : i32
    %2 = arith.cmpi ne, %1, %c0_i32_0 : i32
    scf.if %2 {
      %cst_18 = arith.constant 0.000000e+00 : f32
      %34 = vector.broadcast %cst_18 : f32 to vector<1x4x128xf32>
      %c0_19 = arith.constant 0 : index
      %c0_20 = arith.constant 0 : index
      %c0_21 = arith.constant 0 : index
      %35 = vector.load %arg4[%c0_19, %c0_20, %c0_21] : memref<1x4x128xf32, #tpu.memory_space<vmem>>, vector<1x4x128xf32>
      tpu.vector_store %arg4[%c0_19, %c0_20, %c0_21], %34 {strides = array<i32>} : memref<1x4x128xf32, #tpu.memory_space<vmem>>, vector<1x4x128xf32>,
    } else {
    }
    %c0 = arith.constant 0 : index
    %c0_1 = arith.constant 0 : index
    %3 = vector.load %arg2[%c0, %c0_1] : memref<16x128xf32, #tpu.memory_space<vmem>>, vector<16x128xf32>
    %c0_2 = arith.constant 0 : index
    %c0_3 = arith.constant 0 : index
    %4 = vector.load %arg3[%c0_2, %c0_3] : memref<16x128xf32, #tpu.memory_space<vmem>>, vector<16x128xf32>
    %5 = math.log %3 : vector<16x128xf32>
    %cst = arith.constant -1.000000e+02 : f32
    %6 = vector.broadcast %cst : f32 to vector<16x128xf32>
    %7 = arith.maximumf %5, %6 : vector<16x128xf32>
    %cst_4 = arith.constant 1.000000e+00 : f32
    %8 = vector.broadcast %cst_4 : f32 to vector<16x128xf32>
    %9 = arith.subf %8, %3 : vector<16x128xf32>
    %10 = math.log %9 : vector<16x128xf32>
    %cst_5 = arith.constant -1.000000e+02 : f32
    %11 = vector.broadcast %cst_5 : f32 to vector<16x128xf32>
    %12 = arith.maximumf %10, %11 : vector<16x128xf32>
    %13 = arith.mulf %4, %7 : vector<16x128xf32>
    %cst_6 = arith.constant 1.000000e+00 : f32
    %14 = vector.broadcast %cst_6 : f32 to vector<16x128xf32>
    %15 = arith.subf %14, %4 : vector<16x128xf32>
    %16 = arith.mulf %15, %12 : vector<16x128xf32>
    %17 = arith.addf %13, %16 : vector<16x128xf32>
    %cst_7 = arith.constant 0.000000e+00 : f32
    %18 = vector.broadcast %cst_7 : f32 to vector<16x128xf32>
    %19 = arith.subf %18, %17 : vector<16x128xf32>
    %cst_8 = arith.constant dense<0.000000e+00> : vector<128xf32>
    %20 = vector.multi_reduction <add>, %19, %cst_8 [0] : vector<16x128xf32> to vector<128xf32>
    %21 = vector.shape_cast %20 : vector<128xf32> to vector<1x128xf32>
    %22 = arith.mulf %3, %4 : vector<16x128xf32>
    %cst_9 = arith.constant dense<0.000000e+00> : vector<128xf32>
    %23 = vector.multi_reduction <add>, %22, %cst_9 [0] : vector<16x128xf32> to vector<128xf32>
    %24 = vector.shape_cast %23 : vector<128xf32> to vector<1x128xf32>
    %cst_10 = arith.constant dense<0.000000e+00> : vector<128xf32>
    %25 = vector.multi_reduction <add>, %3, %cst_10 [0] : vector<16x128xf32> to vector<128xf32>
    %26 = vector.shape_cast %25 : vector<128xf32> to vector<1x128xf32>
    %cst_11 = arith.constant dense<0.000000e+00> : vector<128xf32>
    %27 = vector.multi_reduction <add>, %4, %cst_11 [0] : vector<16x128xf32> to vector<128xf32>
    %28 = vector.shape_cast %27 : vector<128xf32> to vector<1x128xf32>
    %29 = tpu.concatenate %21, %24, %26, %28 in 0 : vector<1x128xf32>, vector<1x128xf32>, vector<1x128xf32>, vector<1x128xf32> -> vector<4x128xf32>
    %c0_12 = arith.constant 0 : index
    %c0_13 = arith.constant 0 : index
    %c0_14 = arith.constant 0 : index
    %30 = vector.load %arg4[%c0_12, %c0_13, %c0_14] : memref<1x4x128xf32, #tpu.memory_space<vmem>>, vector<1x4x128xf32>
    %31 = vector.shape_cast %29 : vector<4x128xf32> to vector<1x4x128xf32>
    %32 = arith.addf %30, %31 : vector<1x4x128xf32>
    %c0_15 = arith.constant 0 : index
    %c0_16 = arith.constant 0 : index
    %c0_17 = arith.constant 0 : index
    %33 = vector.load %arg4[%c0_15, %c0_16, %c0_17] : memref<1x4x128xf32, #tpu.memory_space<vmem>>, vector<1x4x128xf32>
    tpu.vector_store %arg4[%c0_15, %c0_16, %c0_17], %32 {strides = array<i32>} : memref<1x4x128xf32, #tpu.memory_space<vmem>>, vector<1x4x128xf32>,
    return
  }
  func.func @transform_0(%arg0: i32, %arg1: i32) -> (i32, i32) {
    %c1_i32 = arith.constant 1 : i32
    %0 = arith.muli %arg0, %c1_i32 : i32
    %1 = arith.addi %0, %arg1 : i32
    %c0_i32 = arith.constant 0 : i32
    %2 = arith.minsi %1, %c0_i32 : i32
    %c0_i32_0 = arith.constant 0 : i32
    %c0_i32_1 = arith.constant 0 : i32
    return %2, %c0_i32_0 : i32, i32
  }
  func.func @transform_1(%arg0: i32, %arg1: i32) -> (i32, i32) {
    %c1_i32 = arith.constant 1 : i32
    %0 = arith.muli %arg0, %c1_i32 : i32
    %1 = arith.addi %0, %arg1 : i32
    %c0_i32 = arith.constant 0 : i32
    %2 = arith.minsi %1, %c0_i32 : i32
    %c0_i32_0 = arith.constant 0 : i32
    %c0_i32_1 = arith.constant 0 : i32
    return %2, %c0_i32_0 : i32, i32
  }
  func.func @transform_2(%arg0: i32, %arg1: i32) -> (i32, i32, i32) {
    %c0_i32 = arith.constant 0 : i32
    %c0_i32_0 = arith.constant 0 : i32
    %c0_i32_1 = arith.constant 0 : i32
    return %arg0, %c0_i32, %c0_i32_0 : i32, i32, i32
  }
}

</mosaic_0001>

<bundles_post_ra>
// kernel: _forward.1
= control target key start
LH: loop header
LB: loop body
LE: loop exit
PB: predicated region body
PF: predicated region fallthrough
CT: control target
= control target key end

     0   :  { %v172_v0 = vmov 0.0   ;;  %vm138_vm0 = vcmask 1040384   ;;  %vm140_vm1 = vcmask 1041408   ;;  %vm142_vm2 = vcmask 1042432   ;;  %s209_s2 = inlined_call_operand.vmem [shape: f32[1,4,128], index: 2, kind: output, shape index: {}]   ;;  %s210_s0 = inlined_call_operand.vmem [shape: f32[16,128], index: 0, kind: input, shape index: {}]   ;;  %s211_s1 = inlined_call_operand.vmem [shape: f32[16,128], index: 1, kind: input, shape index: {}]  }
   0x1   :  { %79 = vst [vmem:[%s209_s2] sm:$0xf] %v172_v0  ;;  %v80_v1 = vld [vmem:[%s210_s0] sm:$0xff]  ;;  %v81_v2 = vld [vmem:[%s210_s0 + $0x8] sm:$0xff] }
   0x2   :  { %164 = vlog2.f32 %v80_v1  ;;  %v90_v3 = vsub.f32 1.0, %v80_v1  ;;  %v91_v4 = vsub.f32 1.0, %v81_v2  ;;  %v82_v5 = vld [vmem:[%s211_s1] sm:$0xff]  ;;  %v83_v6 = vld [vmem:[%s211_s1 + $0x8] sm:$0xff]  ;;  %v124_v13 = vadd.f32 %v81_v2, %v80_v1 }
   0x3   :  { %166 = vlog2.f32 %v81_v2  ;;  %v115_v7 = vmul.f32 %v82_v5, %v80_v1  ;;  %v116_v8 = vmul.f32 %v83_v6, %v81_v2  ;;  %v131_v16 = vadd.f32 %v83_v6, %v82_v5 }
   0x4   :  { %168 = vlog2.f32 %v90_v3  ;;  %v100_v20 = vsub.f32 1.0, %v82_v5  ;;  %v101_v23 = vsub.f32 1.0, %v83_v6  ;;  %v125_v27 = vrot.slane %v124_v13, 4 }
   0x5   :  { %170 = vlog2.f32 %v91_v4  ;;  %v117_v10 = vadd.f32 %v116_v8, %v115_v7  ;;  %v132_v30 = vrot.slane %v131_v16, 4 }
   0x6   :  { %v126_v35 = vadd.f32 %v125_v27, %v124_v13 }
   0x7   :  { %v118_v24 = vrot.slane %v117_v10, 4  ;;  %v133_v37 = vadd.f32 %v132_v30, %v131_v16 }
   0x8   :  { %v127_v41 = vrot.slane %v126_v35, 2  ;;  %v144_v60 = vld [vmem:[%s209_s2] sm:$0xf] }
   0x9   :  { %v119_v33 = vadd.f32 %v118_v24, %v117_v10  ;;  %v134_v43 = vrot.slane %v133_v37, 2 }
   0xa   :  { %v128_v46 = vadd.f32 %v127_v41, %v126_v35 }
   0xb   :  { %v120_v40 = vrot.slane %v119_v33, 2  ;;  %v135_v48 = vadd.f32 %v134_v43, %v133_v37 }
   0xc   :  { %v129_v51 = vrot.slane %v128_v46, 1 }
   0xd   :  { %v121_v45 = vadd.f32 %v120_v40, %v119_v33  ;;  %v136_v53 = vrot.slane %v135_v48, 1 }
   0xe   :  { %v130_v56 = vadd.f32 %v129_v51, %v128_v46 }
   0xf   :  { %v165_v9 = vpop.eup %164  ;;  %v122_v50 = vrot.slane %v121_v45, 1  ;;  %v137_v58 = vadd.f32 %v136_v53, %v135_v48 }
  0x10   :  { %v167_v11 = vpop.eup %166  ;;  %v85_v12 = vmul.f32 0.6931472, %v165_v9 }
  0x11   :  { %v169_v14 = vpop.eup %168  ;;  %v87_v15 = vmul.f32 0.6931472, %v167_v11  ;;  %v123_v55 = vadd.f32 %v122_v50, %v121_v45 }
  0x12   :  { %v171_v17 = vpop.eup %170  ;;  %v88_v18 = vmax.f32 %v85_v12, -100.0  ;;  %v93_v19 = vmul.f32 0.6931472, %v169_v14 }
  0x13   :  { %v89_v21 = vmax.f32 %v87_v15, -100.0  ;;  %v95_v22 = vmul.f32 0.6931472, %v171_v17 }
  0x14   :  { %v96_v25 = vmax.f32 %v93_v19, -100.0  ;;  %v98_v26 = vmul.f32 %v88_v18, %v82_v5 }
  0x15   :  { %v97_v28 = vmax.f32 %v95_v22, -100.0  ;;  %v99_v29 = vmul.f32 %v89_v21, %v83_v6 }
  0x16   :  { %v102_v31 = vmul.f32 %v100_v20, %v96_v25 }
  0x17   :  { %v103_v32 = vmul.f32 %v101_v23, %v97_v28 }
  0x18   :  { %v104_v34 = vadd.f32 %v102_v31, %v98_v26 }
  0x19   :  { %v105_v36 = vadd.f32 %v103_v32, %v99_v29 }
  0x1a   :  { %v106_v38 = vsub.f32 0.0, %v104_v34 }
  0x1b   :  { %v107_v39 = vsub.f32 0.0, %v105_v36 }
  0x1d   :  { %v108_v42 = vadd.f32 %v107_v39, %v106_v38 }
  0x1f   :  { %v109_v44 = vrot.slane %v108_v42, 4 }
  0x21   :  { %v110_v47 = vadd.f32 %v109_v44, %v108_v42 }
  0x23   :  { %v111_v49 = vrot.slane %v110_v47, 2 }
  0x25   :  { %v112_v52 = vadd.f32 %v111_v49, %v110_v47 }
  0x27   :  { %v113_v54 = vrot.slane %v112_v52, 1 }
  0x29   :  { %v114_v57 = vadd.f32 %v113_v54, %v112_v52 }
  0x2b   :  { %v139_v59 = vsel %vm138_vm0, %v114_v57, %v123_v55 }
  0x2c   :  { %v141_v61 = vsel %vm140_vm1, %v139_v59, %v130_v56 }
  0x2d   :  { %v143_v62 = vsel %vm142_vm2, %v141_v61, %v137_v58 }
  0x2e   :  { %v145_v63 = vadd.f32 %v144_v60, %v143_v62 }
  0x30   :  { %146 = vst [vmem:[%s209_s2] sm:$0xf] %v145_v63 }

</bundles_post_ra>
